<compile_context>
chip_gen: v7x
topology: tpu7x:2x2x1
jax: 0.10.0
libtpu: 0.0.40
codegen_flags: <defaults>
</compile_context>

<pallas_src>
import functools

import jax
import jax.numpy as jnp
from jax.experimental import pallas as pl
from jax.experimental.pallas import tpu as pltpu


# ---------------------------------------------------------------------------
# Kernel 1: feature transform  support = x @ W   (bf16 operands, f32 MXU acc)
# ---------------------------------------------------------------------------
def dense_kernel(x_ref, w_ref, out_ref):
    out_ref[...] = jnp.dot(
        x_ref[...], w_ref[...], preferred_element_type=jnp.float32
    ).astype(out_ref.dtype)


def feature_transform(x, w, *, tm):
    """x: [N, F_in] bf16, w: [F_in, F_out] bf16  ->  [N, F_out] bf16."""
    N, f_in = x.shape
    f_out = w.shape[1]
    assert N % tm == 0, "demo assumes divisible tile sizes"
    return pl.pallas_call(
        dense_kernel,
        out_shape=jax.ShapeDtypeStruct((N, f_out), jnp.bfloat16),
        grid_spec=pltpu.PrefetchScalarGridSpec(
            num_scalar_prefetch=0,
            grid=(N // tm,),
            in_specs=[
                pl.BlockSpec((tm, f_in), lambda i: (i, 0)),
                pl.BlockSpec((f_in, f_out), lambda i: (0, 0)),   # W resident
            ],
            out_specs=pl.BlockSpec((tm, f_out), lambda i: (i, 0)),
        ),
        compiler_params=pltpu.CompilerParams(
            dimension_semantics=("parallel",),
        ),
    )(x, w)


# ---------------------------------------------------------------------------
# Kernel 2: propagation  out = act( prop @ support + b )
# ---------------------------------------------------------------------------
def propagate_kernel(prop_ref, s_ref, b_ref, out_ref, acc_ref, *, activation):
    """prop_ref: (TM, TK) bf16, s_ref: (TK, F_out) bf16, b_ref: (1, F_out) f32,
    out_ref: (TM, F_out) f32, acc_ref: (TM, F_out) f32 VMEM scratch."""
    k = pl.program_id(1)

    @pl.when(k == 0)
    def _init():
        acc_ref[...] = jnp.zeros_like(acc_ref)

    acc_ref[...] += jnp.dot(
        prop_ref[...], s_ref[...], preferred_element_type=jnp.float32
    )

    @pl.when(k == pl.num_programs(1) - 1)
    def _finalize():
        h = acc_ref[...] + b_ref[...]          # bias added exactly once per row tile
        if activation == "relu":
            h = jnp.maximum(h, 0.0)
        elif activation == "log_softmax":
            m = jnp.max(h, axis=-1, keepdims=True)
            shifted = h - m
            lse = jnp.log(jnp.sum(jnp.exp(shifted), axis=-1, keepdims=True))
            h = shifted - lse
        out_ref[...] = h.astype(out_ref.dtype)


def propagate(prop, support, b, *, activation, tm, tk):
    """prop: [N, N] bf16, support: [N, F_out] bf16, b: [1, F_out] f32 -> [N, F_out] f32."""
    N = prop.shape[0]
    f_out = support.shape[1]
    assert N % tm == 0 and N % tk == 0, "demo assumes divisible tile sizes"

    kernel = functools.partial(propagate_kernel, activation=activation)
    return pl.pallas_call(
        kernel,
        out_shape=jax.ShapeDtypeStruct((N, f_out), jnp.float32),
        grid_spec=pltpu.PrefetchScalarGridSpec(
            num_scalar_prefetch=0,
            grid=(N // tm, N // tk),
            in_specs=[
                pl.BlockSpec((tm, tk), lambda i, k: (i, k)),      # prop rows / k-slice
                pl.BlockSpec((tk, f_out), lambda i, k: (k, 0)),   # support k-slice
                pl.BlockSpec((1, f_out), lambda i, k: (0, 0)),    # bias (resident)
            ],
            out_specs=pl.BlockSpec((tm, f_out), lambda i, k: (i, 0)),
            scratch_shapes=[pltpu.VMEM((tm, f_out), jnp.float32)],
        ),
        compiler_params=pltpu.CompilerParams(
            dimension_semantics=("parallel", "arbitrary"),
        ),
    )(prop, support, b)


# ---------------------------------------------------------------------------
# Full GCN forward
# ---------------------------------------------------------------------------
def gcn_forward(x, adj, A, w1, b1, w2, b2, *, tm=64, tk=128):
    # bf16 for all MXU operands (incl. the O(N^2) adjacency -> half the HBM bytes);
    # biases / elementwise / accumulation stay f32.
    xb = x.astype(jnp.bfloat16)
    adjb = adj.astype(jnp.bfloat16)
    Ab = A.astype(jnp.bfloat16)
    w1b = w1.astype(jnp.bfloat16)
    w2b = w2.astype(jnp.bfloat16)

    # layer 1: relu(adj @ (x @ W1) + b1)
    s1 = feature_transform(xb, w1b, tm=tm)
    x1 = propagate(adjb, s1, b1, activation="relu", tm=tm, tk=tk)

    # TODO(synk): F.dropout is identity in eval mode; training-mode dropout would use
    # pltpu.prng_seed / pltpu.prng_random_bits inside the kernel, not a host-side mask.

    # layer 2: log_softmax(A @ (x1 @ W2) + b2, dim=1)
    s2 = feature_transform(x1.astype(jnp.bfloat16), w2b, tm=tm)
    logp = propagate(Ab, s2, b2, activation="log_softmax", tm=tm, tk=tk)
    return x1, logp


def reference_forward(x, adj, A, w1, b1, w2, b2):
    """Pure-JAX reference mirroring the kernel's precision choices (bf16 MXU operands)."""
    xb, adjb, Ab = x.astype(jnp.bfloat16), adj.astype(jnp.bfloat16), A.astype(jnp.bfloat16)
    w1b, w2b = w1.astype(jnp.bfloat16), w2.astype(jnp.bfloat16)

    s1 = jnp.dot(xb, w1b, preferred_element_type=jnp.float32)
    h1 = jnp.dot(adjb, s1.astype(jnp.bfloat16), preferred_element_type=jnp.float32) + b1
    h1 = jnp.maximum(h1, 0.0)

    s2 = jnp.dot(h1.astype(jnp.bfloat16), w2b, preferred_element_type=jnp.float32)
    logits = jnp.dot(Ab, s2.astype(jnp.bfloat16), preferred_element_type=jnp.float32) + b2
    return h1, jax.nn.log_softmax(logits, axis=1)


if __name__ == "__main__":
    N, nfeat, nhid, nclass = 128, 32, 16, 8
    key = jax.random.PRNGKey(0)
    kx, kadj, kA, kw1, kb1, kw2, kb2 = jax.random.split(key, 7)

    x = jax.random.normal(kx, (N, nfeat), dtype=jnp.float32)

    # dense (already-normalized) adjacency-like matrices
    adj = jax.random.uniform(kadj, (N, N), dtype=jnp.float32) / N + jnp.eye(N, dtype=jnp.float32)
    A = jax.random.uniform(kA, (N, N), dtype=jnp.float32) / N + jnp.eye(N, dtype=jnp.float32)

    # GraphConvolution params: uniform(-stdv, stdv), stdv = 1/sqrt(out_features)
    stdv1 = 1.0 / jnp.sqrt(jnp.float32(nhid))
    w1 = jax.random.uniform(kw1, (nfeat, nhid), minval=-stdv1, maxval=stdv1, dtype=jnp.float32)
    b1 = jax.random.uniform(kb1, (1, nhid), minval=-stdv1, maxval=stdv1, dtype=jnp.float32)
    stdv2 = 1.0 / jnp.sqrt(jnp.float32(nclass))
    w2 = jax.random.uniform(kw2, (nhid, nclass), minval=-stdv2, maxval=stdv2, dtype=jnp.float32)
    b2 = jax.random.uniform(kb2, (1, nclass), minval=-stdv2, maxval=stdv2, dtype=jnp.float32)

    fwd = jax.jit(gcn_forward)
    x1, logp = jax.block_until_ready(fwd(x, adj, A, w1, b1, w2, b2))

    x1_ref, logp_ref = reference_forward(x, adj, A, w1, b1, w2, b2)
    assert jnp.allclose(x1, x1_ref, atol=2e-3, rtol=2e-3), "x1 mismatch"
    assert jnp.allclose(logp, logp_ref, atol=2e-3, rtol=2e-3), "log_softmax mismatch"

    print("KERNEL_OK")
</pallas_src>

<mosaic_0001>
module attributes {stable_mosaic.version = 11 : i64} {
  func.func @dense_kernel(%arg0: i32, %arg1: memref<64x32xbf16, #tpu.memory_space<vmem>>, %arg2: memref<32x16xbf16, #tpu.memory_space<vmem>>, %arg3: memref<64x16xbf16, #tpu.memory_space<vmem>>) attributes {dimension_semantics = [#tpu.dimension_semantics<parallel>], iteration_bounds = array<i64: 2>, scalar_prefetch = 0 : i64, scratch_operands = 0 : i64, tpu.core_type = #tpu.core_type<tc>, window_params = [{transform_indices = @transform_0, window_bounds = array<i64: 64, 32>}, {pipeline_mode = #tpu.pipeline_mode<synchronous>, transform_indices = @transform_1, window_bounds = array<i64: 32, 16>}, {transform_indices = @transform_2, window_bounds = array<i64: 64, 16>}]} {
    %c0 = arith.constant 0 : index
    %c0_0 = arith.constant 0 : index
    %0 = vector.load %arg1[%c0, %c0_0] : memref<64x32xbf16, #tpu.memory_space<vmem>>, vector<64x32xbf16>
    %c0_1 = arith.constant 0 : index
    %c0_2 = arith.constant 0 : index
    %1 = vector.load %arg2[%c0_1, %c0_2] : memref<32x16xbf16, #tpu.memory_space<vmem>>, vector<32x16xbf16>
    %cst = arith.constant dense<0.000000e+00> : vector<64x16xf32>
    %2 = tpu.matmul %0, %1, %cst {dimension_numbers = #tpu.dot_dimension_numbers<[1], [0], [0], [1], [0, 0, 1, 1], [], []>} : vector<64x32xbf16>, vector<32x16xbf16>, vector<64x16xf32> -> vector<64x16xf32>
    %3 = arith.truncf %2 : vector<64x16xf32> to vector<64x16xbf16>
    %c0_3 = arith.constant 0 : index
    %c0_4 = arith.constant 0 : index
    %4 = vector.load %arg3[%c0_3, %c0_4] : memref<64x16xbf16, #tpu.memory_space<vmem>>, vector<64x16xbf16>
    tpu.vector_store %arg3[%c0_3, %c0_4], %3 {strides = array<i32>} : memref<64x16xbf16, #tpu.memory_space<vmem>>, vector<64x16xbf16>,
    return
  }
  func.func @transform_0(%arg0: i32) -> (i32, i32) {
    %c0_i32 = arith.constant 0 : i32
    %c0_i32_0 = arith.constant 0 : i32
    return %arg0, %c0_i32 : i32, i32
  }
  func.func @transform_1(%arg0: i32) -> (i32, i32) {
    %c0_i32 = arith.constant 0 : i32
    %c0_i32_0 = arith.constant 0 : i32
    %c0_i32_1 = arith.constant 0 : i32
    return %c0_i32, %c0_i32_0 : i32, i32
  }
  func.func @transform_2(%arg0: i32) -> (i32, i32) {
    %c0_i32 = arith.constant 0 : i32
    %c0_i32_0 = arith.constant 0 : i32
    return %arg0, %c0_i32 : i32, i32
  }
}

module attributes {stable_mosaic.version = 11 : i64} {
  func.func @propagate_kernel(%arg0: i32, %arg1: i32, %arg2: memref<64x128xbf16, #tpu.memory_space<vmem>>, %arg3: memref<128x16xbf16, #tpu.memory_space<vmem>>, %arg4: memref<1x16xf32, #tpu.memory_space<vmem>>, %arg5: memref<64x16xf32, #tpu.memory_space<vmem>>, %arg6: memref<64x16xf32, #tpu.memory_space<vmem>>) attributes {dimension_semantics = [#tpu.dimension_semantics<parallel>, #tpu.dimension_semantics<arbitrary>], iteration_bounds = array<i64: 2, 1>, scalar_prefetch = 0 : i64, scratch_operands = 1 : i64, tpu.core_type = #tpu.core_type<tc>, window_params = [{transform_indices = @transform_0, window_bounds = array<i64: 64, 128>}, {transform_indices = @transform_1, window_bounds = array<i64: 128, 16>}, {pipeline_mode = #tpu.pipeline_mode<synchronous>, transform_indices = @transform_2, window_bounds = array<i64: 1, 16>}, {transform_indices = @transform_3, window_bounds = array<i64: 64, 16>}]} {
    %c0_i32 = arith.constant 0 : i32
    %0 = arith.cmpi eq, %arg1, %c0_i32 : i32
    %1 = arith.extui %0 : i1 to i32
    %c0_i32_0 = arith.constant 0 : i32
    %2 = arith.cmpi ne, %1, %c0_i32_0 : i32
    scf.if %2 {
      %cst_10 = arith.constant 0.000000e+00 : f32
      %12 = vector.broadcast %cst_10 : f32 to vector<64x16xf32>
      %c0_11 = arith.constant 0 : index
      %c0_12 = arith.constant 0 : index
      %13 = vector.load %arg6[%c0_11, %c0_12] : memref<64x16xf32, #tpu.memory_space<vmem>>, vector<64x16xf32>
      tpu.vector_store %arg6[%c0_11, %c0_12], %12 {strides = array<i32>} : memref<64x16xf32, #tpu.memory_space<vmem>>, vector<64x16xf32>,
    } else {
    }
    %c0 = arith.constant 0 : index
    %c0_1 = arith.constant 0 : index
    %3 = vector.load %arg6[%c0, %c0_1] : memref<64x16xf32, #tpu.memory_space<vmem>>, vector<64x16xf32>
    %c0_2 = arith.constant 0 : index
    %c0_3 = arith.constant 0 : index
    %4 = vector.load %arg2[%c0_2, %c0_3] : memref<64x128xbf16, #tpu.memory_space<vmem>>, vector<64x128xbf16>
    %c0_4 = arith.constant 0 : index
    %c0_5 = arith.constant 0 : index
    %5 = vector.load %arg3[%c0_4, %c0_5] : memref<128x16xbf16, #tpu.memory_space<vmem>>, vector<128x16xbf16>
    %cst = arith.constant dense<0.000000e+00> : vector<64x16xf32>
    %6 = tpu.matmul %4, %5, %cst {dimension_numbers = #tpu.dot_dimension_numbers<[1], [0], [0], [1], [0, 0, 1, 1], [], []>} : vector<64x128xbf16>, vector<128x16xbf16>, vector<64x16xf32> -> vector<64x16xf32>
    %7 = arith.addf %3, %6 : vector<64x16xf32>
    %c0_6 = arith.constant 0 : index
    %c0_7 = arith.constant 0 : index
    %8 = vector.load %arg6[%c0_6, %c0_7] : memref<64x16xf32, #tpu.memory_space<vmem>>, vector<64x16xf32>
    tpu.vector_store %arg6[%c0_6, %c0_7], %7 {strides = array<i32>} : memref<64x16xf32, #tpu.memory_space<vmem>>, vector<64x16xf32>,
    %c0_i32_8 = arith.constant 0 : i32
    %9 = arith.cmpi eq, %arg1, %c0_i32_8 : i32
    %10 = arith.extui %9 : i1 to i32
    %c0_i32_9 = arith.constant 0 : i32
    %11 = arith.cmpi ne, %10, %c0_i32_9 : i32
    scf.if %11 {
      %c0_10 = arith.constant 0 : index
      %c0_11 = arith.constant 0 : index
      %12 = vector.load %arg6[%c0_10, %c0_11] : memref<64x16xf32, #tpu.memory_space<vmem>>, vector<64x16xf32>
      %c0_12 = arith.constant 0 : index
      %c0_13 = arith.constant 0 : index
      %13 = vector.load %arg4[%c0_12, %c0_13] : memref<1x16xf32, #tpu.memory_space<vmem>>, vector<1x16xf32>
      %14 = vector.broadcast %13 : vector<1x16xf32> to vector<64x16xf32>
      %15 = arith.addf %12, %14 : vector<64x16xf32>
      %cst_14 = arith.constant 0.000000e+00 : f32
      %16 = vector.broadcast %cst_14 : f32 to vector<64x16xf32>
      %17 = arith.maximumf %15, %16 : vector<64x16xf32>
      %c0_15 = arith.constant 0 : index
      %c0_16 = arith.constant 0 : index
      %18 = vector.load %arg5[%c0_15, %c0_16] : memref<64x16xf32, #tpu.memory_space<vmem>>, vector<64x16xf32>
      tpu.vector_store %arg5[%c0_15, %c0_16], %17 {strides = array<i32>} : memref<64x16xf32, #tpu.memory_space<vmem>>, vector<64x16xf32>,
    } else {
    }
    return
  }
  func.func @transform_0(%arg0: i32, %arg1: i32) -> (i32, i32) {
    %c0_i32 = arith.constant 0 : i32
    return %arg0, %arg1 : i32, i32
  }
  func.func @transform_1(%arg0: i32, %arg1: i32) -> (i32, i32) {
    %c0_i32 = arith.constant 0 : i32
    %c0_i32_0 = arith.constant 0 : i32
    return %arg1, %c0_i32 : i32, i32
  }
  func.func @transform_2(%arg0: i32, %arg1: i32) -> (i32, i32) {
    %c0_i32 = arith.constant 0 : i32
    %c0_i32_0 = arith.constant 0 : i32
    %c0_i32_1 = arith.constant 0 : i32
    return %c0_i32, %c0_i32_0 : i32, i32
  }
  func.func @transform_3(%arg0: i32, %arg1: i32) -> (i32, i32) {
    %c0_i32 = arith.constant 0 : i32
    %c0_i32_0 = arith.constant 0 : i32
    return %arg0, %c0_i32 : i32, i32
  }
}

module attributes {stable_mosaic.version = 11 : i64} {
  func.func @dense_kernel(%arg0: i32, %arg1: memref<64x16xbf16, #tpu.memory_space<vmem>>, %arg2: memref<16x8xbf16, #tpu.memory_space<vmem>>, %arg3: memref<64x8xbf16, #tpu.memory_space<vmem>>) attributes {dimension_semantics = [#tpu.dimension_semantics<parallel>], iteration_bounds = array<i64: 2>, scalar_prefetch = 0 : i64, scratch_operands = 0 : i64, tpu.core_type = #tpu.core_type<tc>, window_params = [{transform_indices = @transform_0, window_bounds = array<i64: 64, 16>}, {pipeline_mode = #tpu.pipeline_mode<synchronous>, transform_indices = @transform_1, window_bounds = array<i64: 16, 8>}, {transform_indices = @transform_2, window_bounds = array<i64: 64, 8>}]} {
    %c0 = arith.constant 0 : index
    %c0_0 = arith.constant 0 : index
    %0 = vector.load %arg1[%c0, %c0_0] : memref<64x16xbf16, #tpu.memory_space<vmem>>, vector<64x16xbf16>
    %c0_1 = arith.constant 0 : index
    %c0_2 = arith.constant 0 : index
    %1 = vector.load %arg2[%c0_1, %c0_2] : memref<16x8xbf16, #tpu.memory_space<vmem>>, vector<16x8xbf16>
    %cst = arith.constant dense<0.000000e+00> : vector<64x8xf32>
    %2 = tpu.matmul %0, %1, %cst {dimension_numbers = #tpu.dot_dimension_numbers<[1], [0], [0], [1], [0, 0, 1, 1], [], []>} : vector<64x16xbf16>, vector<16x8xbf16>, vector<64x8xf32> -> vector<64x8xf32>
    %3 = arith.truncf %2 : vector<64x8xf32> to vector<64x8xbf16>
    %c0_3 = arith.constant 0 : index
    %c0_4 = arith.constant 0 : index
    %4 = vector.load %arg3[%c0_3, %c0_4] : memref<64x8xbf16, #tpu.memory_space<vmem>>, vector<64x8xbf16>
    tpu.vector_store %arg3[%c0_3, %c0_4], %3 {strides = array<i32>} : memref<64x8xbf16, #tpu.memory_space<vmem>>, vector<64x8xbf16>,
    return
  }
  func.func @transform_0(%arg0: i32) -> (i32, i32) {
    %c0_i32 = arith.constant 0 : i32
    %c0_i32_0 = arith.constant 0 : i32
    return %arg0, %c0_i32 : i32, i32
  }
  func.func @transform_1(%arg0: i32) -> (i32, i32) {
    %c0_i32 = arith.constant 0 : i32
    %c0_i32_0 = arith.constant 0 : i32
    %c0_i32_1 = arith.constant 0 : i32
    return %c0_i32, %c0_i32_0 : i32, i32
  }
  func.func @transform_2(%arg0: i32) -> (i32, i32) {
    %c0_i32 = arith.constant 0 : i32
    %c0_i32_0 = arith.constant 0 : i32
    return %arg0, %c0_i32 : i32, i32
  }
}

module attributes {stable_mosaic.version = 11 : i64} {
  func.func @propagate_kernel(%arg0: i32, %arg1: i32, %arg2: memref<64x128xbf16, #tpu.memory_space<vmem>>, %arg3: memref<128x8xbf16, #tpu.memory_space<vmem>>, %arg4: memref<1x8xf32, #tpu.memory_space<vmem>>, %arg5: memref<64x8xf32, #tpu.memory_space<vmem>>, %arg6: memref<64x8xf32, #tpu.memory_space<vmem>>) attributes {dimension_semantics = [#tpu.dimension_semantics<parallel>, #tpu.dimension_semantics<arbitrary>], iteration_bounds = array<i64: 2, 1>, scalar_prefetch = 0 : i64, scratch_operands = 1 : i64, tpu.core_type = #tpu.core_type<tc>, window_params = [{transform_indices = @transform_0, window_bounds = array<i64: 64, 128>}, {transform_indices = @transform_1, window_bounds = array<i64: 128, 8>}, {pipeline_mode = #tpu.pipeline_mode<synchronous>, transform_indices = @transform_2, window_bounds = array<i64: 1, 8>}, {transform_indices = @transform_3, window_bounds = array<i64: 64, 8>}]} {
    %c0_i32 = arith.constant 0 : i32
    %0 = arith.cmpi eq, %arg1, %c0_i32 : i32
    %1 = arith.extui %0 : i1 to i32
    %c0_i32_0 = arith.constant 0 : i32
    %2 = arith.cmpi ne, %1, %c0_i32_0 : i32
    scf.if %2 {
      %cst_10 = arith.constant 0.000000e+00 : f32
      %12 = vector.broadcast %cst_10 : f32 to vector<64x8xf32>
      %c0_11 = arith.constant 0 : index
      %c0_12 = arith.constant 0 : index
      %13 = vector.load %arg6[%c0_11, %c0_12] : memref<64x8xf32, #tpu.memory_space<vmem>>, vector<64x8xf32>
      tpu.vector_store %arg6[%c0_11, %c0_12], %12 {strides = array<i32>} : memref<64x8xf32, #tpu.memory_space<vmem>>, vector<64x8xf32>,
    } else {
    }
    %c0 = arith.constant 0 : index
    %c0_1 = arith.constant 0 : index
    %3 = vector.load %arg6[%c0, %c0_1] : memref<64x8xf32, #tpu.memory_space<vmem>>, vector<64x8xf32>
    %c0_2 = arith.constant 0 : index
    %c0_3 = arith.constant 0 : index
    %4 = vector.load %arg2[%c0_2, %c0_3] : memref<64x128xbf16, #tpu.memory_space<vmem>>, vector<64x128xbf16>
    %c0_4 = arith.constant 0 : index
    %c0_5 = arith.constant 0 : index
    %5 = vector.load %arg3[%c0_4, %c0_5] : memref<128x8xbf16, #tpu.memory_space<vmem>>, vector<128x8xbf16>
    %cst = arith.constant dense<0.000000e+00> : vector<64x8xf32>
    %6 = tpu.matmul %4, %5, %cst {dimension_numbers = #tpu.dot_dimension_numbers<[1], [0], [0], [1], [0, 0, 1, 1], [], []>} : vector<64x128xbf16>, vector<128x8xbf16>, vector<64x8xf32> -> vector<64x8xf32>
    %7 = arith.addf %3, %6 : vector<64x8xf32>
    %c0_6 = arith.constant 0 : index
    %c0_7 = arith.constant 0 : index
    %8 = vector.load %arg6[%c0_6, %c0_7] : memref<64x8xf32, #tpu.memory_space<vmem>>, vector<64x8xf32>
    tpu.vector_store %arg6[%c0_6, %c0_7], %7 {strides = array<i32>} : memref<64x8xf32, #tpu.memory_space<vmem>>, vector<64x8xf32>,
    %c0_i32_8 = arith.constant 0 : i32
    %9 = arith.cmpi eq, %arg1, %c0_i32_8 : i32
    %10 = arith.extui %9 : i1 to i32
    %c0_i32_9 = arith.constant 0 : i32
    %11 = arith.cmpi ne, %10, %c0_i32_9 : i32
    scf.if %11 {
      %c0_10 = arith.constant 0 : index
      %c0_11 = arith.constant 0 : index
      %12 = vector.load %arg6[%c0_10, %c0_11] : memref<64x8xf32, #tpu.memory_space<vmem>>, vector<64x8xf32>
      %c0_12 = arith.constant 0 : index
      %c0_13 = arith.constant 0 : index
      %13 = vector.load %arg4[%c0_12, %c0_13] : memref<1x8xf32, #tpu.memory_space<vmem>>, vector<1x8xf32>
      %14 = vector.broadcast %13 : vector<1x8xf32> to vector<64x8xf32>
      %15 = arith.addf %12, %14 : vector<64x8xf32>
      %cst_14 = arith.constant dense<0xFF800000> : vector<64xf32>
      %16 = vector.multi_reduction <maximumf>, %15, %cst_14 [1] : vector<64x8xf32> to vector<64xf32>
      %17 = vector.shape_cast %16 : vector<64xf32> to vector<64x1xf32>
      %18 = vector.broadcast %17 : vector<64x1xf32> to vector<64x8xf32>
      %19 = arith.subf %15, %18 : vector<64x8xf32>
      %20 = math.exp %19 : vector<64x8xf32>
      %cst_15 = arith.constant dense<0.000000e+00> : vector<64xf32>
      %21 = vector.multi_reduction <add>, %20, %cst_15 [1] : vector<64x8xf32> to vector<64xf32>
      %22 = vector.shape_cast %21 : vector<64xf32> to vector<64x1xf32>
      %23 = math.log %22 : vector<64x1xf32>
      %24 = vector.broadcast %23 : vector<64x1xf32> to vector<64x8xf32>
      %25 = arith.subf %19, %24 : vector<64x8xf32>
      %c0_16 = arith.constant 0 : index
      %c0_17 = arith.constant 0 : index
      %26 = vector.load %arg5[%c0_16, %c0_17] : memref<64x8xf32, #tpu.memory_space<vmem>>, vector<64x8xf32>
      tpu.vector_store %arg5[%c0_16, %c0_17], %25 {strides = array<i32>} : memref<64x8xf32, #tpu.memory_space<vmem>>, vector<64x8xf32>,
    } else {
    }
    return
  }
  func.func @transform_0(%arg0: i32, %arg1: i32) -> (i32, i32) {
    %c0_i32 = arith.constant 0 : i32
    return %arg0, %arg1 : i32, i32
  }
  func.func @transform_1(%arg0: i32, %arg1: i32) -> (i32, i32) {
    %c0_i32 = arith.constant 0 : i32
    %c0_i32_0 = arith.constant 0 : i32
    return %arg1, %c0_i32 : i32, i32
  }
  func.func @transform_2(%arg0: i32, %arg1: i32) -> (i32, i32) {
    %c0_i32 = arith.constant 0 : i32
    %c0_i32_0 = arith.constant 0 : i32
    %c0_i32_1 = arith.constant 0 : i32
    return %c0_i32, %c0_i32_0 : i32, i32
  }
  func.func @transform_3(%arg0: i32, %arg1: i32) -> (i32, i32) {
    %c0_i32 = arith.constant 0 : i32
    %c0_i32_0 = arith.constant 0 : i32
    return %arg0, %c0_i32 : i32, i32
  }
}

</mosaic_0001>

<bundles_post_ra>
// kernel: gcn_forward.7
= control target key start
LH: loop header
LB: loop body
LE: loop exit
PB: predicated region body
PF: predicated region fallthrough
CT: control target
= control target key end

     0   :  { %s823_s12 = smov 0   ;;  %s825_s13 = smov 0   ;;  %s975_s0 = inlined_call_operand.vmem [shape: bf16[128,128], index: 0, kind: input, shape index: {}]   ;;  %s976_s1 = inlined_call_operand.vmem [shape: bf16[128,8], index: 1, kind: input, shape index: {}]   ;;  %s977_s2 = inlined_call_operand.vmem [shape: f32[1,8], index: 2, kind: input, shape index: {}]   ;;  %s978_s3 = inlined_call_operand.vmem [shape: f32[128,8], index: 3, kind: output, shape index: {}]  }
   0x1   :  { %s827_s14 = smov 0  }
   0x2 LB: > { %s25_s15 = sadd.s32 1, %s796_s13  ;;  %p637_p0 = scmp.ge.s32.totalorder %s800_s14, 1  ;;  %s800_s14 = sphi %s827_s14, %s13_s14   ;;  %s796_s13 = sphi %s825_s13, %s980_s13   ;;  %s792_s12 = sphi %s823_s12, %s979_s12  }
   0x3   : > { %p27_p1 = scmp.ge.s32.totalorder %s25_s15, 2  ;;  %p166_p2 = scmp.lt.s32.totalorder %s800_s14, 3 }
   0x5   : > { %s982_s15 = smov (%p27_p1, %s25_s15), 0  ;;  %p167_p3 = pnand %p637_p0, %p166_p2 }
   0x6   : > { %v734_v0 = vld [vmem:[%s976_s1] sm:$0xff] (!%p167_p3)   ;;  %s638_s18 = sshll.u32 (!%p167_p3), %s792_s12, 3  ;;  %v735_v1 = vld [vmem:[%s976_s1 + $0x8] sm:$0xff] (!%p167_p3)   ;;  %vm224_vm0 = vcmask (!%p167_p3), 64512   ;;  %v736_v2 = vld [vmem:[%s976_s1 + $0x10] sm:$0xff] (!%p167_p3)   ;;  %v802_v3 = vmov (!%p167_p3), 0.0  }
   0x7   : > { %170 = sbr.rel (%p167_p3) target bundleno = 597 (0x255), region = 32  ;;  %p199_p4 = scmp.lt.s32.totalorder (!%p167_p3), %s638_s18, 15  ;;  %669 = vmatprep.subr.bf16.mxu0 (!%p167_p3), %v734_v0  ;;  %693 = vmatprep.subr.bf16.mxu1 (!%p167_p3), %v734_v0  ;;  %227 = vst.msk [vmem:[#allocation2 + $0x10] sm:$0xff] (!%p167_p3), %vm224_vm0, %v802_v3  ;;  %225 = vst.msk [vmem:[#allocation2] sm:$0xff] (!%p167_p3), %vm224_vm0, %v802_v3  ;;  %v737_v4 = vld [vmem:[%s976_s1 + $0x18] sm:$0xff] (!%p167_p3)   ;;  %v738_v7 = vld [vmem:[%s976_s1 + $0x20] sm:$0xff] (!%p167_p3)  }
   0x8   : > { %670 = vmatpush3.bf16.msra.mxu0 (!%p167_p3), %v734_v0  ;;  %701 = vmatpush3.bf16.msra.mxu1 (!%p167_p3), %v734_v0  ;;  %226 = vst.msk [vmem:[#allocation2 + $0x8] sm:$0xff] (!%p167_p3), %vm224_vm0, %v802_v3  ;;  %228 = vst.msk [vmem:[#allocation2 + $0x18] sm:$0xff] (!%p167_p3), %vm224_vm0, %v802_v3  ;;  %v739_v8 = vld [vmem:[%s976_s1 + $0x28] sm:$0xff] (!%p167_p3)   ;;  %v740_v9 = vld [vmem:[%s976_s1 + $0x30] sm:$0xff] (!%p167_p3)  }
   0x9   : > { %671 = vmatprep.subr.bf16.mxu0 (!%p167_p3), %v735_v1  ;;  %694 = vmatprep.subr.bf16.mxu1 (!%p167_p3), %v735_v1  ;;  %229 = vst.msk [vmem:[#allocation2 + $0x20] sm:$0xff] (!%p167_p3), %vm224_vm0, %v802_v3  ;;  %230 = vst.msk [vmem:[#allocation2 + $0x28] sm:$0xff] (!%p167_p3), %vm224_vm0, %v802_v3  ;;  %v741_v10 = vld [vmem:[%s976_s1 + $0x38] sm:$0xff] (!%p167_p3)   ;;  %v654_v37 = vld [vmem:[%s977_s2] ss:$0 sm:$0xff] (!%p167_p3) }
   0xa   : > { %231 = vst.msk [vmem:[#allocation2 + $0x30] sm:$0xff] (!%p167_p3), %vm224_vm0, %v802_v3  ;;  %232 = vst.msk [vmem:[#allocation2 + $0x38] sm:$0xff] (!%p167_p3), %vm224_vm0, %v802_v3 }
   0xc   : > { %672 = vmatpush3.bf16.msra.mxu0 (!%p167_p3), %v735_v1  ;;  %702 = vmatpush3.bf16.msra.mxu1 (!%p167_p3), %v735_v1 }
   0xd   : > { %673 = vmatprep.subr.bf16.mxu0 (!%p167_p3), %v736_v2  ;;  %695 = vmatprep.subr.bf16.mxu1 (!%p167_p3), %v736_v2 }
   0xe   : > { %s984_s18 = smov (!%p199_p4, %s638_s18), 15  ;;  %v235_v13 = vld [vmem:[#allocation2 + $0x10] sm:$0xff]  ;;  %v233_v15 = vld [vmem:[#allocation2] sm:$0xff] }
   0xf   : > { %s639_s23 = sshll.u32 %s984_s18, 2  ;;  %v236_v19 = vld [vmem:[#allocation2 + $0x18] sm:$0xff]  ;;  %v234_v25 = vld [vmem:[#allocation2 + $0x8] sm:$0xff]  ;;  %s641_s12 = sshll.u32 %s984_s18, 3 }
  0x10   : > { %s864_s26 = scalar_lea.vmem %s975_s0, %s639_s23  ;;  %674 = vmatpush3.bf16.msra.mxu0 %v736_v2  ;;  %703 = vmatpush3.bf16.msra.mxu1 %v736_v2  ;;  %v237_v16 = vld [vmem:[#allocation2 + $0x20] sm:$0xff]  ;;  %v238_v26 = vld [vmem:[#allocation2 + $0x28] sm:$0xff]  ;;  %s940_s19 = scalar_lea.vmem %s978_s3, %s641_s12 }
  0x11   : > { %v742_v5 = vld [vmem:[%s864_s26] sm:$0xff]   ;;  %v744_v6 = vld [vmem:[%s864_s26 + $0x10] sm:$0xff]   ;;  %675 = vmatprep.subr.bf16.mxu0 %v737_v4  ;;  %696 = vmatprep.subr.bf16.mxu1 %v737_v4  ;;  %v743_v11 = vld [vmem:[%s864_s26 + $0x8] sm:$0xff]  }
  0x12   : > { %685 = vmatprep.mubr.bf16.mxu0 %v742_v5  ;;  %689 = vmatprep.mubr.bf16.mxu1 %v744_v6  ;;  %v745_v12 = vld [vmem:[%s864_s26 + $0x18] sm:$0xff]   ;;  %v239_v14 = vld [vmem:[#allocation2 + $0x30] sm:$0xff] }
  0x13   : > { %v240_v20 = vld [vmem:[#allocation2 + $0x38] sm:$0xff] }
  0x14   : > { %676 = vmatpush3.bf16.msra.mxu0 %v737_v4  ;;  %704 = vmatpush3.bf16.msra.mxu1 %v737_v4 }
  0x15   : > { %677 = vmatprep.subr.bf16.mxu0 %v738_v7  ;;  %697 = vmatprep.subr.bf16.mxu1 %v738_v7 }
  0x18   : > { %678 = vmatpush3.bf16.msra.mxu0 %v738_v7  ;;  %705 = vmatpush3.bf16.msra.mxu1 %v738_v7 }
  0x19   : > { %679 = vmatprep.subr.bf16.mxu0 %v739_v8  ;;  %698 = vmatprep.subr.bf16.mxu1 %v739_v8 }
  0x1c   : > { %680 = vmatpush3.bf16.msra.mxu0 %v739_v8  ;;  %706 = vmatpush3.bf16.msra.mxu1 %v739_v8 }
  0x1d   : > { %681 = vmatprep.subr.bf16.mxu0 %v740_v9  ;;  %699 = vmatprep.subr.bf16.mxu1 %v740_v9 }
  0x20   : > { %682 = vmatpush3.bf16.msra.mxu0 %v740_v9  ;;  %707 = vmatpush3.bf16.msra.mxu1 %v740_v9 }
  0x21   : > { %683 = vmatprep.subr.bf16.mxu0 %v741_v10  ;;  %700 = vmatprep.subr.bf16.mxu1 %v741_v10 }
  0x24   : > { %684 = vmatpush3.bf16.msra.mxu0 %v741_v10  ;;  %708 = vmatpush3.bf16.msra.mxu1 %v741_v10 }
  0x27   : > { %686 = vmatmul.mubr.bf16.vlgmr.msra.gmra.mrb[0].mxu0 %v743_v11  ;;  %690 = vmatmul.mubr.bf16.vlgmr.msra.gmra.mrb[0].mxu1 %v745_v12 }
  0xfa   : > { %v687_v17 = vpop.f32.mrb[0].mxu0  ;;  %v691_v18 = vpop.f32.mrb[0].mxu1 }
  0xfb   : > { %v404_v21 = vadd.f32 %v687_v17, %v235_v13  ;;  %v371_v22 = vpop.f32.mrb[1].mxu0  ;;  %v408_v23 = vadd.f32 %v691_v18, %v239_v14  ;;  %v387_v24 = vpop.f32.mrb[1].mxu1 }
  0xfc   : > { %v402_v27 = vadd.f32 %v371_v22, %v233_v15  ;;  %v688_v28 = vpop.f32.mrb[2].mxu0  ;;  %v406_v29 = vadd.f32 %v387_v24, %v237_v16  ;;  %v692_v30 = vpop.f32.mrb[2].mxu1 }
  0xfd   : > { %413 = vst.msk [vmem:[#allocation2 + $0x10] sm:$0xff] %vm224_vm0, %v404_v21  ;;  %417 = vst.msk [vmem:[#allocation2 + $0x30] sm:$0xff] %vm224_vm0, %v408_v23  ;;  %v405_v31 = vadd.f32 %v688_v28, %v236_v19  ;;  %v374_v32 = vpop.f32.mrb[3].mxu0  ;;  %v409_v33 = vadd.f32 %v692_v30, %v240_v20  ;;  %v390_v34 = vpop.f32.mrb[3].mxu1 }
  0xfe   : > { %411 = vst.msk [vmem:[#allocation2] sm:$0xff] %vm224_vm0, %v402_v27  ;;  %415 = vst.msk [vmem:[#allocation2 + $0x20] sm:$0xff] %vm224_vm0, %v406_v29  ;;  %v403_v35 = vadd.f32 %v374_v32, %v234_v25  ;;  %v407_v36 = vadd.f32 %v390_v34, %v238_v26 }
  0xff   : > { %414 = vst.msk [vmem:[#allocation2 + $0x18] sm:$0xff] %vm224_vm0, %v405_v31  ;;  %418 = vst.msk [vmem:[#allocation2 + $0x38] sm:$0xff] %vm224_vm0, %v409_v33 }
 0x100   : > { %412 = vst.msk [vmem:[#allocation2 + $0x8] sm:$0xff] %vm224_vm0, %v403_v35  ;;  %416 = vst.msk [vmem:[#allocation2 + $0x28] sm:$0xff] %vm224_vm0, %v407_v36 }
 0x104   : > { %v424_v38 = vld [vmem:[#allocation2 + $0x10] sm:$0xff] }
 0x105   : > { %v439_v39 = vadd.f32 %v654_v37, %v424_v38  ;;  %v422_v40 = vld [vmem:[#allocation2] sm:$0xff]  ;;  %v428_v55 = vld [vmem:[#allocation2 + $0x30] sm:$0xff] }
 0x106   : > { %v426_v41 = vld [vmem:[#allocation2 + $0x20] sm:$0xff]  ;;  %v437_v42 = vadd.f32 %v654_v37, %v422_v40  ;;  %v425_v43 = vld [vmem:[#allocation2 + $0x18] sm:$0xff]  ;;  %v443_v59 = vadd.f32 %v654_v37, %v428_v55 }
 0x107   : > { %v441_v44 = vadd.f32 %v654_v37, %v426_v41  ;;  %v451_v45 = vsel %vm224_vm0, %v439_v39, -inf  ;;  %v440_v46 = vadd.f32 %v654_v37, %v425_v43  ;;  %v427_v48 = vld [vmem:[#allocation2 + $0x28] sm:$0xff]  ;;  %v429_v54 = vld [vmem:[#allocation2 + $0x38] sm:$0xff] }
 0x108   : > { %452 = vmax.xlane.f32.xlu1 %v451_v45  ;;  %v445_v47 = vsel %vm224_vm0, %v437_v42, -inf  ;;  %v423_v49 = vld [vmem:[#allocation2 + $0x8] sm:$0xff]  ;;  %v442_v52 = vadd.f32 %v654_v37, %v427_v48  ;;  %v444_v57 = vadd.f32 %v654_v37, %v429_v54  ;;  %v463_v61 = vsel %vm224_vm0, %v443_v59, -inf }
 0x109   : > { %446 = vmax.xlane.f32.xlu0 %v445_v47  ;;  %v457_v50 = vsel %vm224_vm0, %v441_v44, -inf  ;;  %v454_v51 = vsel %vm224_vm0, %v440_v46, -inf  ;;  %v438_v53 = vadd.f32 %v654_v37, %v423_v49 }
 0x10a   : > { %v460_v56 = vsel %vm224_vm0, %v442_v52, -inf  ;;  %v466_v60 = vsel %vm224_vm0, %v444_v57, -inf }
 0x10b   : > { %v448_v58 = vsel %vm224_vm0, %v438_v53, -inf }
 0x10c   : > { %455 = vmax.xlane.f32.xlu1 %v454_v51 }
 0x10d   : > { %458 = vmax.xlane.f32.xlu0 %v457_v50 }
 0x110   : > { %461 = vmax.xlane.f32.xlu1 %v460_v56 }
 0x111   : > { %449 = vmax.xlane.f32.xlu0 %v448_v58 }
 0x114   : > { %467 = vmax.xlane.f32.xlu1 %v466_v60 }
 0x115   : > { %464 = vmax.xlane.f32.xlu0 %v463_v61 }
 0x195   : > { %v453_v62 = vpop.xlane.xlu1 %452 }
 0x196   : > { %v904_v63 = vsub.f32 %v439_v39, %v453_v62  ;;  %v447_v0 = vpop.xlane.xlu0 %446 }
 0x197   : > { %v906_v1 = vsub.f32 %v437_v42, %v447_v0 }
 0x198   : > { %v481_v2 = vmul.f32 1.442695, %v904_v63 }
 0x199   : > { %v477_v3 = vmul.f32 1.442695, %v906_v1  ;;  %v456_v4 = vpop.xlane.xlu1 %455 }
 0x19a   : > { %746 = vpow2.f32 %v481_v2  ;;  %v910_v5 = vsub.f32 %v440_v46, %v456_v4  ;;  %v459_v6 = vpop.xlane.xlu0 %458 }
 0x19b   : > { %v912_v7 = vsub.f32 %v441_v44, %v459_v6  ;;  %748 = vpow2.f32 %v477_v3 }
 0x19c   : > { %v483_v8 = vmul.f32 1.442695, %v910_v5 }
 0x19d   : > { %v485_v9 = vmul.f32 1.442695, %v912_v7  ;;  %v462_v10 = vpop.xlane.xlu1 %461 }
 0x19e   : > { %750 = vpow2.f32 %v483_v8  ;;  %v916_v11 = vsub.f32 %v442_v52, %v462_v10  ;;  %v450_v12 = vpop.xlane.xlu0 %449 }
 0x19f   : > { %v918_v13 = vsub.f32 %v438_v53, %v450_v12  ;;  %752 = vpow2.f32 %v485_v9 }
 0x1a0   : > { %v487_v14 = vmul.f32 1.442695, %v916_v11 }
 0x1a1   : > { %v479_v15 = vmul.f32 1.442695, %v918_v13  ;;  %v468_v16 = vpop.xlane.xlu1 %467 }
 0x1a2   : > { %v922_v17 = vsub.f32 %v444_v57, %v468_v16  ;;  %v465_v18 = vpop.xlane.xlu0 %464 }
 0x1a3   : > { %754 = vpow2.f32 %v479_v15  ;;  %v924_v19 = vsub.f32 %v443_v59, %v465_v18 }
 0x1a4   : > { %v747_v20 = vpop.eup %746  ;;  %756 = vpow2.f32 %v487_v14  ;;  %v491_v21 = vmul.f32 1.442695, %v922_v17 }
 0x1a5   : > { %v489_v22 = vmul.f32 1.442695, %v924_v19  ;;  %v499_v23 = vsel %vm224_vm0, %v747_v20, 0.0  ;;  %v749_v24 = vpop.eup %748 }
 0x1a6   : > { %500 = vadd.xlane.f32.xlu0 %v499_v23  ;;  %v493_v27 = vsel %vm224_vm0, %v749_v24, 0.0 }
 0x1a7   : > { %758 = vpow2.f32 %v489_v22 }
 0x1a8   : > { %v751_v25 = vpop.eup %750  ;;  %760 = vpow2.f32 %v491_v21 }
 0x1a9   : > { %v502_v26 = vsel %vm224_vm0, %v751_v25, 0.0  ;;  %v753_v28 = vpop.eup %752 }
 0x1aa   : > { %503 = vadd.xlane.f32.xlu1 %v502_v26  ;;  %494 = vadd.xlane.f32.xlu0 %v493_v27  ;;  %v505_v30 = vsel %vm224_vm0, %v753_v28, 0.0 }
 0x1ad   : > { %v755_v29 = vpop.eup %754 }
 0x1ae   : > { %506 = vadd.xlane.f32.xlu0 %v505_v30  ;;  %v496_v31 = vsel %vm224_vm0, %v755_v29, 0.0  ;;  %v757_v32 = vpop.eup %756 }
 0x1af   : > { %497 = vadd.xlane.f32.xlu1 %v496_v31  ;;  %v508_v34 = vsel %vm224_vm0, %v757_v32, 0.0 }
 0x1b1   : > { %v759_v33 = vpop.eup %758 }
 0x1b2   : > { %v511_v35 = vsel %vm224_vm0, %v759_v33, 0.0  ;;  %v761_v36 = vpop.eup %760 }
 0x1b3   : > { %509 = vadd.xlane.f32.xlu1 %v508_v34  ;;  %512 = vadd.xlane.f32.xlu0 %v511_v35  ;;  %v514_v37 = vsel %vm224_vm0, %v761_v36, 0.0 }
 0x1b7   : > { %515 = vadd.xlane.f32.xlu1 %v514_v37 }
 0x233   : > { %v501_v38 = vpop.xlane.xlu0 %500 }
 0x234   : > { %762 = vlog2.f32 %v501_v38 }
 0x237   : > { %v504_v39 = vpop.xlane.xlu1 %503  ;;  %v495_v40 = vpop.xlane.xlu0 %494 }
 0x238   : > { %764 = vlog2.f32 %v504_v39 }
 0x239   : > { %766 = vlog2.f32 %v495_v40 }
 0x23b   : > { %v507_v41 = vpop.xlane.xlu0 %506 }
 0x23c   : > { %768 = vlog2.f32 %v507_v41  ;;  %v498_v42 = vpop.xlane.xlu1 %497 }
 0x23d   : > { %770 = vlog2.f32 %v498_v42 }
 0x23e   : > { %v763_v43 = vpop.eup %762 }
 0x23f   : > { %v522_v44 = vmul.f32 0.6931472, %v763_v43 }
 0x240   : > { %v510_v45 = vpop.xlane.xlu1 %509  ;;  %v513_v46 = vpop.xlane.xlu0 %512 }
 0x241   : > { %v535_v47 = vsub.f32 %v904_v63, %v522_v44  ;;  %772 = vlog2.f32 %v510_v45 }
 0x242   : > { %v765_v48 = vpop.eup %764  ;;  %774 = vlog2.f32 %v513_v46 }
 0x243   : > { %v767_v49 = vpop.eup %766  ;;  %543 = vst.msk [vmem:[%s940_s19 + $0x10] sm:$0xff] %vm224_vm0, %v535_v47  ;;  %v524_v50 = vmul.f32 0.6931472, %v765_v48 }
 0x244   : > { %v518_v51 = vmul.f32 0.6931472, %v767_v49  ;;  %v516_v52 = vpop.xlane.xlu1 %515 }
 0x245   : > { %v536_v53 = vsub.f32 %v910_v5, %v524_v50  ;;  %776 = vlog2.f32 %v516_v52 }
 0x246   : > { %v769_v54 = vpop.eup %768  ;;  %v533_v55 = vsub.f32 %v906_v1, %v518_v51 }
 0x247   : > { %v771_v56 = vpop.eup %770  ;;  %544 = vst.msk [vmem:[%s940_s19 + $0x18] sm:$0xff] %vm224_vm0, %v536_v53  ;;  %v526_v57 = vmul.f32 0.6931472, %v769_v54 }
 0x248   : > { %541 = vst.msk [vmem:[%s940_s19] sm:$0xff] %vm224_vm0, %v533_v55  ;;  %v520_v58 = vmul.f32 0.6931472, %v771_v56 }
 0x249   : > { %v537_v59 = vsub.f32 %v912_v7, %v526_v57 }
 0x24a   : > { %v534_v60 = vsub.f32 %v918_v13, %v520_v58 }
 0x24b   : > { %v773_v61 = vpop.eup %772  ;;  %545 = vst.msk [vmem:[%s940_s19 + $0x20] sm:$0xff] %vm224_vm0, %v537_v59 }
 0x24c   : > { %v775_v62 = vpop.eup %774  ;;  %542 = vst.msk [vmem:[%s940_s19 + $0x8] sm:$0xff] %vm224_vm0, %v534_v60  ;;  %v528_v63 = vmul.f32 0.6931472, %v773_v61 }
 0x24d   : > { %v530_v0 = vmul.f32 0.6931472, %v775_v62 }
 0x24e   : > { %v538_v1 = vsub.f32 %v916_v11, %v528_v63 }
 0x24f   : > { %v777_v2 = vpop.eup %776  ;;  %v539_v3 = vsub.f32 %v924_v19, %v530_v0 }
 0x250   : > { %546 = vst.msk [vmem:[%s940_s19 + $0x28] sm:$0xff] %vm224_vm0, %v538_v1  ;;  %v532_v4 = vmul.f32 0.6931472, %v777_v2 }
 0x251   : > { %547 = vst.msk [vmem:[%s940_s19 + $0x30] sm:$0xff] %vm224_vm0, %v539_v3 }
 0x252   : > { %v540_v5 = vsub.f32 %v922_v17, %v532_v4 }
 0x254   : > { %548 = vst.msk [vmem:[%s940_s19 + $0x38] sm:$0xff] %vm224_vm0, %v540_v5 }
 0x255 PF: > { %s13_s14 = sadd.s32 1, %s800_s14   ;;  %s979_s12 = smov %s796_s13 }
 0x256   : > { %p10_p5 = scmp.ge.s32.totalorder %s13_s14, 4   ;;  %s980_s13 = smov %s982_s15 }
 0x258   :  { %12 = sbr.rel (!%p10_p5) target bundleno = 2 (0x2), region = 73 }

// kernel: gcn_forward.5
= control target key start
LH: loop header
LB: loop body
LE: loop exit
PB: predicated region body
PF: predicated region fallthrough
CT: control target
= control target key end

     0   :  { %s703_s12 = smov 0   ;;  %s705_s13 = smov 0   ;;  %s797_s0 = inlined_call_operand.vmem [shape: bf16[128,128], index: 0, kind: input, shape index: {}]   ;;  %s798_s1 = inlined_call_operand.vmem [shape: bf16[128,16], index: 1, kind: input, shape index: {}]   ;;  %s799_s2 = inlined_call_operand.vmem [shape: f32[1,16], index: 2, kind: input, shape index: {}]   ;;  %s800_s3 = inlined_call_operand.vmem [shape: f32[128,16], index: 3, kind: output, shape index: {}]  }
   0x1   :  { %s707_s14 = smov 0  }
   0x2 LB: > { %s25_s15 = sadd.s32 1, %s676_s13  ;;  %p549_p0 = scmp.ge.s32.totalorder %s680_s14, 1  ;;  %s680_s14 = sphi %s707_s14, %s13_s14   ;;  %s676_s13 = sphi %s705_s13, %s802_s13   ;;  %s672_s12 = sphi %s703_s12, %s801_s12  }
   0x3   : > { %p27_p1 = scmp.ge.s32.totalorder %s25_s15, 2  ;;  %p166_p2 = scmp.lt.s32.totalorder %s680_s14, 3 }
   0x5   : > { %s804_s15 = smov (%p27_p1, %s25_s15), 0  ;;  %p167_p3 = pnand %p549_p0, %p166_p2 }
   0x6   : > { %v646_v0 = vld [vmem:[%s798_s1] sm:$0xff] (!%p167_p3)   ;;  %s550_s18 = sshll.u32 (!%p167_p3), %s672_s12, 3  ;;  %v647_v1 = vld [vmem:[%s798_s1 + $0x8] sm:$0xff] (!%p167_p3)   ;;  %vm224_vm0 = vcmask (!%p167_p3), 130048   ;;  %v648_v2 = vld [vmem:[%s798_s1 + $0x10] sm:$0xff] (!%p167_p3)   ;;  %v682_v3 = vmov (!%p167_p3), 0.0  }
   0x7   : > { %170 = sbr.rel (%p167_p3) target bundleno = 270 (0x10e), region = 32  ;;  %p199_p4 = scmp.lt.s32.totalorder (!%p167_p3), %s550_s18, 15  ;;  %581 = vmatprep.subr.bf16.mxu0 (!%p167_p3), %v646_v0  ;;  %605 = vmatprep.subr.bf16.mxu1 (!%p167_p3), %v646_v0  ;;  %227 = vst.msk [vmem:[#allocation2 + $0x10] sm:$0xff] (!%p167_p3), %vm224_vm0, %v682_v3  ;;  %225 = vst.msk [vmem:[#allocation2] sm:$0xff] (!%p167_p3), %vm224_vm0, %v682_v3  ;;  %v649_v4 = vld [vmem:[%s798_s1 + $0x18] sm:$0xff] (!%p167_p3)   ;;  %v650_v7 = vld [vmem:[%s798_s1 + $0x20] sm:$0xff] (!%p167_p3)  }
   0x8   : > { %582 = vmatpush3.bf16.msra.mxu0 (!%p167_p3), %v646_v0  ;;  %613 = vmatpush3.bf16.msra.mxu1 (!%p167_p3), %v646_v0  ;;  %226 = vst.msk [vmem:[#allocation2 + $0x8] sm:$0xff] (!%p167_p3), %vm224_vm0, %v682_v3  ;;  %228 = vst.msk [vmem:[#allocation2 + $0x18] sm:$0xff] (!%p167_p3), %vm224_vm0, %v682_v3  ;;  %v651_v8 = vld [vmem:[%s798_s1 + $0x28] sm:$0xff] (!%p167_p3)   ;;  %v652_v9 = vld [vmem:[%s798_s1 + $0x30] sm:$0xff] (!%p167_p3)  }
   0x9   : > { %583 = vmatprep.subr.bf16.mxu0 (!%p167_p3), %v647_v1  ;;  %606 = vmatprep.subr.bf16.mxu1 (!%p167_p3), %v647_v1  ;;  %229 = vst.msk [vmem:[#allocation2 + $0x20] sm:$0xff] (!%p167_p3), %vm224_vm0, %v682_v3  ;;  %230 = vst.msk [vmem:[#allocation2 + $0x28] sm:$0xff] (!%p167_p3), %vm224_vm0, %v682_v3  ;;  %v653_v10 = vld [vmem:[%s798_s1 + $0x38] sm:$0xff] (!%p167_p3)   ;;  %v566_v37 = vld [vmem:[%s799_s2] ss:$0 sm:$0xff] (!%p167_p3) }
   0xa   : > { %231 = vst.msk [vmem:[#allocation2 + $0x30] sm:$0xff] (!%p167_p3), %vm224_vm0, %v682_v3  ;;  %232 = vst.msk [vmem:[#allocation2 + $0x38] sm:$0xff] (!%p167_p3), %vm224_vm0, %v682_v3 }
   0xc   : > { %584 = vmatpush3.bf16.msra.mxu0 (!%p167_p3), %v647_v1  ;;  %614 = vmatpush3.bf16.msra.mxu1 (!%p167_p3), %v647_v1 }
   0xd   : > { %585 = vmatprep.subr.bf16.mxu0 (!%p167_p3), %v648_v2  ;;  %607 = vmatprep.subr.bf16.mxu1 (!%p167_p3), %v648_v2 }
   0xe   : > { %s806_s18 = smov (!%p199_p4, %s550_s18), 15  ;;  %v235_v13 = vld [vmem:[#allocation2 + $0x10] sm:$0xff]  ;;  %v233_v15 = vld [vmem:[#allocation2] sm:$0xff] }
   0xf   : > { %s551_s23 = sshll.u32 %s806_s18, 2  ;;  %v236_v19 = vld [vmem:[#allocation2 + $0x18] sm:$0xff]  ;;  %v234_v25 = vld [vmem:[#allocation2 + $0x8] sm:$0xff]  ;;  %s553_s12 = sshll.u32 %s806_s18, 3 }
  0x10   : > { %s744_s26 = scalar_lea.vmem %s797_s0, %s551_s23  ;;  %586 = vmatpush3.bf16.msra.mxu0 %v648_v2  ;;  %615 = vmatpush3.bf16.msra.mxu1 %v648_v2  ;;  %v237_v16 = vld [vmem:[#allocation2 + $0x20] sm:$0xff]  ;;  %v238_v26 = vld [vmem:[#allocation2 + $0x28] sm:$0xff]  ;;  %s217_s19 = scalar_lea.vmem %s800_s3, %s553_s12 }
  0x11   : > { %v654_v5 = vld [vmem:[%s744_s26] sm:$0xff]   ;;  %v655_v6 = vld [vmem:[%s744_s26 + $0x10] sm:$0xff]   ;;  %587 = vmatprep.subr.bf16.mxu0 %v649_v4  ;;  %608 = vmatprep.subr.bf16.mxu1 %v649_v4  ;;  %v656_v11 = vld [vmem:[%s744_s26 + $0x8] sm:$0xff]  }
  0x12   : > { %597 = vmatprep.mubr.bf16.mxu0 %v654_v5  ;;  %601 = vmatprep.mubr.bf16.mxu1 %v655_v6  ;;  %v657_v12 = vld [vmem:[%s744_s26 + $0x18] sm:$0xff]   ;;  %v239_v14 = vld [vmem:[#allocation2 + $0x30] sm:$0xff] }
  0x13   : > { %v240_v20 = vld [vmem:[#allocation2 + $0x38] sm:$0xff] }
  0x14   : > { %588 = vmatpush3.bf16.msra.mxu0 %v649_v4  ;;  %616 = vmatpush3.bf16.msra.mxu1 %v649_v4 }
  0x15   : > { %589 = vmatprep.subr.bf16.mxu0 %v650_v7  ;;  %609 = vmatprep.subr.bf16.mxu1 %v650_v7 }
  0x18   : > { %590 = vmatpush3.bf16.msra.mxu0 %v650_v7  ;;  %617 = vmatpush3.bf16.msra.mxu1 %v650_v7 }
  0x19   : > { %591 = vmatprep.subr.bf16.mxu0 %v651_v8  ;;  %610 = vmatprep.subr.bf16.mxu1 %v651_v8 }
  0x1c   : > { %592 = vmatpush3.bf16.msra.mxu0 %v651_v8  ;;  %618 = vmatpush3.bf16.msra.mxu1 %v651_v8 }
  0x1d   : > { %593 = vmatprep.subr.bf16.mxu0 %v652_v9  ;;  %611 = vmatprep.subr.bf16.mxu1 %v652_v9 }
  0x20   : > { %594 = vmatpush3.bf16.msra.mxu0 %v652_v9  ;;  %619 = vmatpush3.bf16.msra.mxu1 %v652_v9 }
  0x21   : > { %595 = vmatprep.subr.bf16.mxu0 %v653_v10  ;;  %612 = vmatprep.subr.bf16.mxu1 %v653_v10 }
  0x24   : > { %596 = vmatpush3.bf16.msra.mxu0 %v653_v10  ;;  %620 = vmatpush3.bf16.msra.mxu1 %v653_v10 }
  0x27   : > { %598 = vmatmul.mubr.bf16.vlgmr.msra.gmra.mrb[0].mxu0 %v656_v11  ;;  %602 = vmatmul.mubr.bf16.vlgmr.msra.gmra.mrb[0].mxu1 %v657_v12 }
  0xfa   : > { %v599_v17 = vpop.f32.mrb[0].mxu0  ;;  %v603_v18 = vpop.f32.mrb[0].mxu1 }
  0xfb   : > { %v404_v21 = vadd.f32 %v599_v17, %v235_v13  ;;  %v408_v22 = vadd.f32 %v603_v18, %v239_v14  ;;  %v371_v23 = vpop.f32.mrb[1].mxu0  ;;  %v387_v24 = vpop.f32.mrb[1].mxu1 }
  0xfc   : > { %v402_v27 = vadd.f32 %v371_v23, %v233_v15  ;;  %v406_v28 = vadd.f32 %v387_v24, %v237_v16  ;;  %v600_v29 = vpop.f32.mrb[2].mxu0  ;;  %v604_v30 = vpop.f32.mrb[2].mxu1 }
  0xfd   : > { %413 = vst.msk [vmem:[#allocation2 + $0x10] sm:$0xff] %vm224_vm0, %v404_v21  ;;  %417 = vst.msk [vmem:[#allocation2 + $0x30] sm:$0xff] %vm224_vm0, %v408_v22  ;;  %v405_v31 = vadd.f32 %v600_v29, %v236_v19  ;;  %v409_v32 = vadd.f32 %v604_v30, %v240_v20  ;;  %v374_v33 = vpop.f32.mrb[3].mxu0  ;;  %v390_v34 = vpop.f32.mrb[3].mxu1 }
  0xfe   : > { %411 = vst.msk [vmem:[#allocation2] sm:$0xff] %vm224_vm0, %v402_v27  ;;  %415 = vst.msk [vmem:[#allocation2 + $0x20] sm:$0xff] %vm224_vm0, %v406_v28  ;;  %v403_v35 = vadd.f32 %v374_v33, %v234_v25  ;;  %v407_v36 = vadd.f32 %v390_v34, %v238_v26 }
  0xff   : > { %414 = vst.msk [vmem:[#allocation2 + $0x18] sm:$0xff] %vm224_vm0, %v405_v31  ;;  %418 = vst.msk [vmem:[#allocation2 + $0x38] sm:$0xff] %vm224_vm0, %v409_v32 }
 0x100   : > { %412 = vst.msk [vmem:[#allocation2 + $0x8] sm:$0xff] %vm224_vm0, %v403_v35  ;;  %416 = vst.msk [vmem:[#allocation2 + $0x28] sm:$0xff] %vm224_vm0, %v407_v36 }
 0x104   : > { %v424_v38 = vld [vmem:[#allocation2 + $0x10] sm:$0xff] }
 0x105   : > { %v428_v39 = vld [vmem:[#allocation2 + $0x30] sm:$0xff]  ;;  %v439_v40 = vadd.f32 %v566_v37, %v424_v38  ;;  %v422_v42 = vld [vmem:[#allocation2] sm:$0xff] }
 0x106   : > { %v443_v41 = vadd.f32 %v566_v37, %v428_v39  ;;  %v426_v43 = vld [vmem:[#allocation2 + $0x20] sm:$0xff]  ;;  %v437_v44 = vadd.f32 %v566_v37, %v422_v42  ;;  %v425_v46 = vld [vmem:[#allocation2 + $0x18] sm:$0xff] }
 0x107   : > { %v441_v45 = vadd.f32 %v566_v37, %v426_v43  ;;  %v429_v47 = vld [vmem:[#allocation2 + $0x38] sm:$0xff]  ;;  %v447_v48 = vmax.f32 %v439_v40, 0.0  ;;  %v440_v50 = vadd.f32 %v566_v37, %v425_v46  ;;  %v423_v52 = vld [vmem:[#allocation2 + $0x8] sm:$0xff] }
 0x108   : > { %v451_v49 = vmax.f32 %v443_v41, 0.0  ;;  %v444_v51 = vadd.f32 %v566_v37, %v429_v47  ;;  %v427_v53 = vld [vmem:[#allocation2 + $0x28] sm:$0xff]  ;;  %v445_v54 = vmax.f32 %v437_v44, 0.0  ;;  %v438_v56 = vadd.f32 %v566_v37, %v423_v52 }
 0x109   : > { %v449_v55 = vmax.f32 %v441_v45, 0.0  ;;  %v442_v57 = vadd.f32 %v566_v37, %v427_v53  ;;  %455 = vst.msk [vmem:[%s217_s19 + $0x10] sm:$0xff] %vm224_vm0, %v447_v48  ;;  %v448_v58 = vmax.f32 %v440_v50, 0.0 }
 0x10a   : > { %459 = vst.msk [vmem:[%s217_s19 + $0x30] sm:$0xff] %vm224_vm0, %v451_v49  ;;  %v452_v59 = vmax.f32 %v444_v51, 0.0  ;;  %453 = vst.msk [vmem:[%s217_s19] sm:$0xff] %vm224_vm0, %v445_v54  ;;  %v446_v60 = vmax.f32 %v438_v56, 0.0 }
 0x10b   : > { %457 = vst.msk [vmem:[%s217_s19 + $0x20] sm:$0xff] %vm224_vm0, %v449_v55  ;;  %v450_v61 = vmax.f32 %v442_v57, 0.0  ;;  %456 = vst.msk [vmem:[%s217_s19 + $0x18] sm:$0xff] %vm224_vm0, %v448_v58 }
 0x10c   : > { %460 = vst.msk [vmem:[%s217_s19 + $0x38] sm:$0xff] %vm224_vm0, %v452_v59  ;;  %454 = vst.msk [vmem:[%s217_s19 + $0x8] sm:$0xff] %vm224_vm0, %v446_v60 }
 0x10d   : > { %458 = vst.msk [vmem:[%s217_s19 + $0x28] sm:$0xff] %vm224_vm0, %v450_v61 }
 0x10e PF: > { %s13_s14 = sadd.s32 1, %s680_s14   ;;  %s801_s12 = smov %s676_s13 }
 0x10f   : > { %p10_p5 = scmp.ge.s32.totalorder %s13_s14, 4   ;;  %s802_s13 = smov %s804_s15 }
 0x111   :  { %12 = sbr.rel (!%p10_p5) target bundleno = 2 (0x2), region = 73 }

// kernel: gcn_forward.6
= control target key start
LH: loop header
LB: loop body
LE: loop exit
PB: predicated region body
PF: predicated region fallthrough
CT: control target
= control target key end

     0   :  { %s448_s9 = smov 0   ;;  %s476_s0 = inlined_call_operand.vmem [shape: bf16[128,16], index: 0, kind: input, shape index: {}]   ;;  %s477_s1 = inlined_call_operand.vmem [shape: bf16[16,8], index: 1, kind: input, shape index: {}]   ;;  %s478_s2 = inlined_call_operand.vmem [shape: bf16[128,8], index: 2, kind: output, shape index: {}]  }
   0x1 LB: > { %s359_s10 = sadd.s32 4294967295, %s431_s9   ;;  %p363_p0 = scmp.ge.s32.totalorder %s431_s9, 1  ;;  %s431_s9 = sphi %s448_s9, %s12_s9  }
   0x2   : > { %p113_p1 = scmp.lt.s32.totalorder %s431_s9, 3 }
   0x4   : > { %p114_p2 = pnand %p363_p0, %p113_p1 }
   0x5   : > { %v420_v0 = vld [vmem:[%s477_s1] sm:$0xff] (!%p114_p2)   ;;  %s364_s13 = sshll.u32 (!%p114_p2), %s359_s10, 3  ;;  %vm184_vm0 = vcmask (!%p114_p2), 130048   ;;  %vm294_vm1 = vcmask (!%p114_p2), 60416  }
   0x6   : > { %117 = sbr.rel (%p114_p2) target bundleno = 236 (0xec), region = 28  ;;  %p136_p3 = scmp.lt.s32.totalorder (!%p114_p2), %s364_s13, 15  ;;  %400 = vmatprep.subr.bf16.mxu0 (!%p114_p2), %v420_v0  ;;  %410 = vmatprep.subr.bf16.mxu1 (!%p114_p2), %v420_v0 }
   0x7   : > { %401 = vmatpush3.bf16.msra.mxu0 (!%p114_p2), %v420_v0  ;;  %411 = vmatpush3.bf16.msra.mxu1 (!%p114_p2), %v420_v0 }
   0xd   : > { %s480_s13 = smov (!%p136_p3, %s364_s13), 15 }
   0xe   : > { %s365_s14 = sshll.u32 %s480_s13, 2 }
   0xf   : > { %s139_s17 = scalar_lea.vmem %s476_s0, %s365_s14  ;;  %s145_s20 = scalar_lea.vmem %s478_s2, %s365_s14 }
  0x10   : > { %v421_v1 = vld [vmem:[%s139_s17] sm:$0xff]   ;;  %v422_v2 = vld [vmem:[%s139_s17 + $0x10] sm:$0xff]   ;;  %v423_v3 = vld [vmem:[%s139_s17 + $0x8] sm:$0xff]  }
  0x11   : > { %402 = vmatprep.mubr.msk.bf16.mxu0 %vm184_vm0, %v421_v1  ;;  %406 = vmatprep.mubr.msk.bf16.mxu1 %vm184_vm0, %v422_v2  ;;  %v424_v4 = vld [vmem:[%s139_s17 + $0x18] sm:$0xff]  }
  0x12   : > { %403 = vmatmul.mubr.msk.bf16.vlgmr.msra.gmra.mrb[0].mxu0 %vm184_vm0, %v423_v3  ;;  %407 = vmatmul.mubr.msk.bf16.vlgmr.msra.gmra.mrb[0].mxu1 %vm184_vm0, %v424_v4 }
  0xe5   : > { %v404_v5 = vpop.f32.mrb[0].mxu0  ;;  %v408_v7 = vpop.f32.mrb[0].mxu1 }
  0xe6   : > { %v389_v6 = vpack.c.bf16 %v404_v5, %v404_v5  ;;  %v231_v8 = vpop.f32.mrb[1].mxu0  ;;  %v393_v9 = vpack.c.bf16 %v408_v7, %v408_v7  ;;  %v247_v11 = vpop.f32.mrb[1].mxu1 }
  0xe7   : > { %v387_v10 = vpack.c.bf16 %v231_v8, %v231_v8  ;;  %v405_v12 = vpop.f32.mrb[2].mxu0  ;;  %v391_v13 = vpack.c.bf16 %v247_v11, %v247_v11  ;;  %v409_v15 = vpop.f32.mrb[2].mxu1 }
  0xe8   : > { %297 = vst.msk [vmem:[%s145_s20 + $0x8] sm:$0xf] %vm294_vm1, %v389_v6  ;;  %v390_v14 = vpack.c.bf16 %v405_v12, %v405_v12  ;;  %v234_v16 = vpop.f32.mrb[3].mxu0  ;;  %301 = vst.msk [vmem:[%s145_s20 + $0x18] sm:$0xf] %vm294_vm1, %v393_v9  ;;  %v394_v17 = vpack.c.bf16 %v409_v15, %v409_v15  ;;  %v250_v19 = vpop.f32.mrb[3].mxu1 }
  0xe9   : > { %295 = vst.msk [vmem:[%s145_s20] sm:$0xf] %vm294_vm1, %v387_v10  ;;  %v388_v18 = vpack.c.bf16 %v234_v16, %v234_v16  ;;  %299 = vst.msk [vmem:[%s145_s20 + $0x10] sm:$0xf] %vm294_vm1, %v391_v13  ;;  %v392_v20 = vpack.c.bf16 %v250_v19, %v250_v19 }
  0xea   : > { %298 = vst.msk [vmem:[%s145_s20 + $0xc] sm:$0xf] %vm294_vm1, %v390_v14  ;;  %302 = vst.msk [vmem:[%s145_s20 + $0x1c] sm:$0xf] %vm294_vm1, %v394_v17 }
  0xeb   : > { %296 = vst.msk [vmem:[%s145_s20 + $0x4] sm:$0xf] %vm294_vm1, %v388_v18  ;;  %300 = vst.msk [vmem:[%s145_s20 + $0x14] sm:$0xf] %vm294_vm1, %v392_v20 }
  0xec PF: > { %s12_s9 = sadd.s32 1, %s431_s9  }
  0xed   : > { %p9_p4 = scmp.ge.s32.totalorder %s12_s9, 4  }
  0xef   :  { %11 = sbr.rel (!%p9_p4) target bundleno = 1 (0x1), region = 58 }

// kernel: gcn_forward.4
= control target key start
LH: loop header
LB: loop body
LE: loop exit
PB: predicated region body
PF: predicated region fallthrough
CT: control target
= control target key end

     0   :  { %s463_s9 = smov 0   ;;  %s494_s0 = inlined_call_operand.vmem [shape: bf16[128,32], index: 0, kind: input, shape index: {}]   ;;  %s495_s1 = inlined_call_operand.vmem [shape: bf16[32,16], index: 1, kind: input, shape index: {}]   ;;  %s496_s2 = inlined_call_operand.vmem [shape: bf16[128,16], index: 2, kind: output, shape index: {}]  }
   0x1 LB: > { %s367_s10 = sadd.s32 4294967295, %s446_s9   ;;  %p371_p0 = scmp.ge.s32.totalorder %s446_s9, 1  ;;  %s446_s9 = sphi %s463_s9, %s12_s9  }
   0x2   : > { %p113_p1 = scmp.lt.s32.totalorder %s446_s9, 3 }
   0x4   : > { %p114_p2 = pnand %p371_p0, %p113_p1 }
   0x5   : > { %v434_v0 = vld [vmem:[%s495_s1] sm:$0xff] (!%p114_p2)   ;;  %s372_s13 = sshll.u32 (!%p114_p2), %s367_s10, 3  ;;  %v435_v1 = vld [vmem:[%s495_s1 + $0x8] sm:$0xff] (!%p114_p2)   ;;  %vm192_vm0 = vcmask (!%p114_p2), 261120   ;;  %vm302_vm1 = vcmask (!%p114_p2), 125952  }
   0x6   : > { %117 = sbr.rel (%p114_p2) target bundleno = 236 (0xec), region = 28  ;;  %p136_p3 = scmp.lt.s32.totalorder (!%p114_p2), %s372_s13, 15  ;;  %410 = vmatprep.subr.bf16.mxu0 (!%p114_p2), %v434_v0  ;;  %422 = vmatprep.subr.bf16.mxu1 (!%p114_p2), %v434_v0 }
   0x7   : > { %411 = vmatpush3.bf16.msra.mxu0 (!%p114_p2), %v434_v0  ;;  %424 = vmatpush3.bf16.msra.mxu1 (!%p114_p2), %v434_v0 }
   0x8   : > { %412 = vmatprep.subr.bf16.mxu0 (!%p114_p2), %v435_v1  ;;  %423 = vmatprep.subr.bf16.mxu1 (!%p114_p2), %v435_v1 }
   0xb   : > { %413 = vmatpush3.bf16.msra.mxu0 (!%p114_p2), %v435_v1  ;;  %425 = vmatpush3.bf16.msra.mxu1 (!%p114_p2), %v435_v1 }
   0xd   : > { %s498_s13 = smov (!%p136_p3, %s372_s13), 15 }
   0xe   : > { %s373_s16 = sshll.u32 %s498_s13, 2 }
   0xf   : > { %s139_s19 = scalar_lea.vmem %s494_s0, %s373_s16  ;;  %s145_s22 = scalar_lea.vmem %s496_s2, %s373_s16 }
  0x10   : > { %v436_v2 = vld [vmem:[%s139_s19] sm:$0xff]   ;;  %v437_v3 = vld [vmem:[%s139_s19 + $0x10] sm:$0xff]   ;;  %v438_v4 = vld [vmem:[%s139_s19 + $0x8] sm:$0xff]  }
  0x11   : > { %414 = vmatprep.mubr.msk.bf16.mxu0 %vm192_vm0, %v436_v2  ;;  %418 = vmatprep.mubr.msk.bf16.mxu1 %vm192_vm0, %v437_v3  ;;  %v439_v5 = vld [vmem:[%s139_s19 + $0x18] sm:$0xff]  }
  0x12   : > { %415 = vmatmul.mubr.msk.bf16.vlgmr.msra.gmra.mrb[0].mxu0 %vm192_vm0, %v438_v4  ;;  %419 = vmatmul.mubr.msk.bf16.vlgmr.msra.gmra.mrb[0].mxu1 %vm192_vm0, %v439_v5 }
  0xe5   : > { %v416_v6 = vpop.f32.mrb[0].mxu0  ;;  %v420_v8 = vpop.f32.mrb[0].mxu1 }
  0xe6   : > { %v398_v7 = vpack.c.bf16 %v416_v6, %v416_v6  ;;  %v239_v9 = vpop.f32.mrb[1].mxu0  ;;  %v402_v10 = vpack.c.bf16 %v420_v8, %v420_v8  ;;  %v255_v12 = vpop.f32.mrb[1].mxu1 }
  0xe7   : > { %v396_v11 = vpack.c.bf16 %v239_v9, %v239_v9  ;;  %v417_v13 = vpop.f32.mrb[2].mxu0  ;;  %v400_v14 = vpack.c.bf16 %v255_v12, %v255_v12  ;;  %v421_v16 = vpop.f32.mrb[2].mxu1 }
  0xe8   : > { %305 = vst.msk [vmem:[%s145_s22 + $0x8] sm:$0xf] %vm302_vm1, %v398_v7  ;;  %v399_v15 = vpack.c.bf16 %v417_v13, %v417_v13  ;;  %v242_v17 = vpop.f32.mrb[3].mxu0  ;;  %309 = vst.msk [vmem:[%s145_s22 + $0x18] sm:$0xf] %vm302_vm1, %v402_v10  ;;  %v403_v18 = vpack.c.bf16 %v421_v16, %v421_v16  ;;  %v258_v20 = vpop.f32.mrb[3].mxu1 }
  0xe9   : > { %303 = vst.msk [vmem:[%s145_s22] sm:$0xf] %vm302_vm1, %v396_v11  ;;  %v397_v19 = vpack.c.bf16 %v242_v17, %v242_v17  ;;  %307 = vst.msk [vmem:[%s145_s22 + $0x10] sm:$0xf] %vm302_vm1, %v400_v14  ;;  %v401_v21 = vpack.c.bf16 %v258_v20, %v258_v20 }
  0xea   : > { %306 = vst.msk [vmem:[%s145_s22 + $0xc] sm:$0xf] %vm302_vm1, %v399_v15  ;;  %310 = vst.msk [vmem:[%s145_s22 + $0x1c] sm:$0xf] %vm302_vm1, %v403_v18 }
  0xeb   : > { %304 = vst.msk [vmem:[%s145_s22 + $0x4] sm:$0xf] %vm302_vm1, %v397_v19  ;;  %308 = vst.msk [vmem:[%s145_s22 + $0x14] sm:$0xf] %vm302_vm1, %v401_v21 }
  0xec PF: > { %s12_s9 = sadd.s32 1, %s446_s9  }
  0xed   : > { %p9_p4 = scmp.ge.s32.totalorder %s12_s9, 4  }
  0xef   :  { %11 = sbr.rel (!%p9_p4) target bundleno = 1 (0x1), region = 58 }

</bundles_post_ra>
